<compile_context>
chip_gen: v7x
topology: tpu7x:2x2x1
jax: 0.10.0
libtpu: 0.0.40
codegen_flags: <defaults>
</compile_context>

<pallas_src>
import jax
import jax.numpy as jnp
from jax.experimental import pallas as pl
from jax.experimental.pallas import tpu as pltpu

LANE = 128
SUBLANE = 8


def _round_up(x, m):
    return ((x + m - 1) // m) * m


def _cdiv(a, b):
    return (a + b - 1) // b


def actor_kernel(obs_ref,
                 w1_ref, b1_ref,
                 w2_ref, b2_ref,
                 w3_ref, b3_ref,
                 w4_ref, b4_ref,
                 out_ref):
    # Matmuls in bf16 (MXU-native) with f32 accumulation; elementwise in f32.
    # Intermediates that Mosaic streams through VMEM are the bf16 casts
    # (bias + ReLU + cast fused before any store), halving vst traffic on the
    # wide 512-column layer (matters most on v5e's single vector-store slot).
    x = obs_ref[...].astype(jnp.bfloat16)

    h = jnp.dot(x, w1_ref[...], preferred_element_type=jnp.float32) + b1_ref[...]
    h = jnp.maximum(h, 0.0).astype(jnp.bfloat16)

    h = jnp.dot(h, w2_ref[...], preferred_element_type=jnp.float32) + b2_ref[...]
    h = jnp.maximum(h, 0.0).astype(jnp.bfloat16)

    h = jnp.dot(h, w3_ref[...], preferred_element_type=jnp.float32) + b3_ref[...]
    h = jnp.maximum(h, 0.0).astype(jnp.bfloat16)

    h = jnp.dot(h, w4_ref[...], preferred_element_type=jnp.float32) + b4_ref[...]

    # Only the real action columns are written back (out last dim == act_dim,
    # the full array extent, so the narrow block is legal); tanh only on them.
    act_dim = out_ref.shape[1]
    out_ref[...] = jnp.tanh(h[:, :act_dim])


def prepare_params(params):
    """Zero-pad out-feature dims to multiples of 128 lanes, cast W to bf16.

    params: list of (W, b) with W:(in, out) f32, b:(1, out) f32.
    Consecutive layers are padded consistently (layer i's padded out-dim is
    layer i+1's padded in-dim).  Padded rows/cols are zero, so padded
    activations stay zero through ReLU and do not change the result (the
    kernel never stores the padded output columns of the last layer).
    """
    dims_in = [w.shape[0] for w, _ in params]
    dims_out = [w.shape[1] for w, _ in params]
    padded_out = [_round_up(d, LANE) for d in dims_out]
    padded_in = [dims_in[0]] + padded_out[:-1]

    out = []
    for (w, b), pin, pout in zip(params, padded_in, padded_out):
        w_p = jnp.zeros((pin, pout), jnp.float32).at[: w.shape[0], : w.shape[1]].set(w)
        b_p = jnp.zeros((1, pout), jnp.float32).at[:, : b.shape[1]].set(b)
        out.append((w_p.astype(jnp.bfloat16), b_p))
    return out


def actor_forward(obs, padded_params, act_dim, *, tile_b=2048, min_grid_steps=2):
    """obs: (B, obs_dim) f32.  padded_params: output of prepare_params."""
    B, obs_dim = obs.shape
    (w1, b1), (w2, b2), (w3, b3), (w4, b4) = padded_params

    # --- batch tiling ---------------------------------------------------
    # Force the tile to a sublane multiple, pick the number of grid steps
    # first (>= min_grid_steps when B is big enough, so v7x's two TensorCores
    # both get work), then derive a tile that bounds padding to a few rows.
    tile_b = max(SUBLANE, (int(tile_b) // SUBLANE) * SUBLANE)
    n_steps = _cdiv(B, tile_b)
    if B >= 2 * SUBLANE:
        n_steps = max(n_steps, min_grid_steps)
    tb = _round_up(_cdiv(B, n_steps), SUBLANE)
    B_pad = n_steps * tb
    if B_pad != B:
        obs = jnp.pad(obs, ((0, B_pad - B), (0, 0)))
    grid = (n_steps,)

    def resident(i):  # weights/biases stay VMEM-resident across grid steps
        return (0, 0)

    # Advisory cost hint for XLA's scheduler around this short custom call.
    flops = 2 * B_pad * sum(int(w.shape[0]) * int(w.shape[1]) for w, _ in padded_params)
    bytes_accessed = (
        B_pad * obs_dim * 4
        + sum(int(w.size) * w.dtype.itemsize + int(b.size) * 4 for w, b in padded_params)
        + B_pad * act_dim * 4
    )
    cost = pl.CostEstimate(flops=flops,
                           transcendentals=B_pad * act_dim,
                           bytes_accessed=bytes_accessed)

    out = pl.pallas_call(
        actor_kernel,
        out_shape=jax.ShapeDtypeStruct((B_pad, act_dim), jnp.float32),
        grid=grid,
        in_specs=[
            pl.BlockSpec((tb, obs_dim), lambda i: (i, 0)),
            pl.BlockSpec(w1.shape, resident), pl.BlockSpec(b1.shape, resident),
            pl.BlockSpec(w2.shape, resident), pl.BlockSpec(b2.shape, resident),
            pl.BlockSpec(w3.shape, resident), pl.BlockSpec(b3.shape, resident),
            pl.BlockSpec(w4.shape, resident), pl.BlockSpec(b4.shape, resident),
        ],
        out_specs=pl.BlockSpec((tb, act_dim), lambda i: (i, 0)),
        compiler_params=pltpu.CompilerParams(
            dimension_semantics=("parallel",)),
        cost_estimate=cost,
    )(obs, w1, b1, w2, b2, w3, b3, w4, b4)

    if B_pad != B:
        out = out[:B]  # row slice only; no column slice / extra HBM round trip
    return out


def init_params(key, obs_dim, act_dim, hidden_size):
    """Deterministic synthetic init (not a checkpoint load), f32."""
    dims = [(obs_dim, hidden_size), (hidden_size, 512), (512, 128), (128, act_dim)]
    params = []
    for (fan_in, fan_out) in dims:
        key, kw, kb = jax.random.split(key, 3)
        scale = 1.0 / jnp.sqrt(jnp.float32(fan_in))
        w = jax.random.uniform(kw, (fan_in, fan_out), jnp.float32, -scale, scale)
        b = jax.random.uniform(kb, (1, fan_out), jnp.float32, -scale, scale)
        params.append((w, b))
    return params


def actor_reference(obs, params):
    """Pure f32 JAX reference matching the PyTorch module semantics."""
    h = obs
    for i, (w, b) in enumerate(params):
        h = h @ w + b
        if i < len(params) - 1:
            h = jnp.maximum(h, 0.0)
    return jnp.tanh(h)


if __name__ == "__main__":
    obs_dim, act_dim, hidden_size = 32, 8, 64

    key = jax.random.PRNGKey(0)
    key, k_obs1, k_obs2, k_obs3 = jax.random.split(key, 4)
    params = init_params(key, obs_dim, act_dim, hidden_size)
    padded_params = prepare_params(params)

    # Test 1: tiny batch -> single grid step, lane-masked narrow output store.
    obs1 = jax.random.normal(k_obs1, (8, obs_dim), jnp.float32)
    out1 = jax.block_until_ready(actor_forward(obs1, padded_params, act_dim))
    ref1 = actor_reference(obs1, params)
    assert out1.shape == (8, act_dim)
    # bf16 matmuls with f32 accumulation -> loosened tolerance vs f32 reference.
    assert jnp.allclose(out1, ref1, atol=3e-2, rtol=3e-2), "mismatch vs JAX reference (B=8)"

    # Test 2: batch not a multiple of the tile -> exercises batch padding and a
    # multi-step grid with weight-resident BlockSpecs.
    obs2 = jax.random.normal(k_obs2, (20, obs_dim), jnp.float32)
    out2 = jax.block_until_ready(actor_forward(obs2, padded_params, act_dim, tile_b=16))
    ref2 = actor_reference(obs2, params)
    assert out2.shape == (20, act_dim)
    assert jnp.allclose(out2, ref2, atol=3e-2, rtol=3e-2), "mismatch vs JAX reference (B=20)"

    # Test 3: default tile_b -> exercises the >=2-step clamp (megacore sharding
    # on v7x) and the padding-bounded tile derivation.
    obs3 = jax.random.normal(k_obs3, (200, obs_dim), jnp.float32)
    out3 = jax.block_until_ready(actor_forward(obs3, padded_params, act_dim))
    ref3 = actor_reference(obs3, params)
    assert out3.shape == (200, act_dim)
    assert jnp.allclose(out3, ref3, atol=3e-2, rtol=3e-2), "mismatch vs JAX reference (B=200)"

    print("KERNEL_OK")
</pallas_src>

<mosaic_0001>
module attributes {stable_mosaic.version = 11 : i64} {
  func.func @actor_kernel(%arg0: i32, %arg1: memref<8x32xf32, #tpu.memory_space<vmem>>, %arg2: memref<32x128xbf16, #tpu.memory_space<vmem>>, %arg3: memref<1x128xf32, #tpu.memory_space<vmem>>, %arg4: memref<128x512xbf16, #tpu.memory_space<vmem>>, %arg5: memref<1x512xf32, #tpu.memory_space<vmem>>, %arg6: memref<512x128xbf16, #tpu.memory_space<vmem>>, %arg7: memref<1x128xf32, #tpu.memory_space<vmem>>, %arg8: memref<128x128xbf16, #tpu.memory_space<vmem>>, %arg9: memref<1x128xf32, #tpu.memory_space<vmem>>, %arg10: memref<8x8xf32, #tpu.memory_space<vmem>>) attributes {dimension_semantics = [#tpu.dimension_semantics<parallel>], iteration_bounds = array<i64: 1>, scalar_prefetch = 0 : i64, scratch_operands = 0 : i64, tpu.core_type = #tpu.core_type<tc>, window_params = [{transform_indices = @transform_0, window_bounds = array<i64: 8, 32>}, {pipeline_mode = #tpu.pipeline_mode<synchronous>, transform_indices = @transform_1, window_bounds = array<i64: 32, 128>}, {pipeline_mode = #tpu.pipeline_mode<synchronous>, transform_indices = @transform_2, window_bounds = array<i64: 1, 128>}, {pipeline_mode = #tpu.pipeline_mode<synchronous>, transform_indices = @transform_3, window_bounds = array<i64: 128, 512>}, {pipeline_mode = #tpu.pipeline_mode<synchronous>, transform_indices = @transform_4, window_bounds = array<i64: 1, 512>}, {pipeline_mode = #tpu.pipeline_mode<synchronous>, transform_indices = @transform_5, window_bounds = array<i64: 512, 128>}, {pipeline_mode = #tpu.pipeline_mode<synchronous>, transform_indices = @transform_6, window_bounds = array<i64: 1, 128>}, {pipeline_mode = #tpu.pipeline_mode<synchronous>, transform_indices = @transform_7, window_bounds = array<i64: 128, 128>}, {pipeline_mode = #tpu.pipeline_mode<synchronous>, transform_indices = @transform_8, window_bounds = array<i64: 1, 128>}, {transform_indices = @transform_9, window_bounds = array<i64: 8, 8>}]} {
    %c0 = arith.constant 0 : index
    %c0_0 = arith.constant 0 : index
    %0 = vector.load %arg1[%c0, %c0_0] : memref<8x32xf32, #tpu.memory_space<vmem>>, vector<8x32xf32>
    %1 = arith.truncf %0 : vector<8x32xf32> to vector<8x32xbf16>
    %c0_1 = arith.constant 0 : index
    %c0_2 = arith.constant 0 : index
    %2 = vector.load %arg2[%c0_1, %c0_2] : memref<32x128xbf16, #tpu.memory_space<vmem>>, vector<32x128xbf16>
    %cst = arith.constant dense<0.000000e+00> : vector<8x128xf32>
    %3 = tpu.matmul %1, %2, %cst {dimension_numbers = #tpu.dot_dimension_numbers<[1], [0], [0], [1], [0, 0, 1, 1], [], []>} : vector<8x32xbf16>, vector<32x128xbf16>, vector<8x128xf32> -> vector<8x128xf32>
    %c0_3 = arith.constant 0 : index
    %c0_4 = arith.constant 0 : index
    %4 = vector.load %arg3[%c0_3, %c0_4] : memref<1x128xf32, #tpu.memory_space<vmem>>, vector<1x128xf32>
    %5 = vector.broadcast %4 : vector<1x128xf32> to vector<8x128xf32>
    %6 = arith.addf %3, %5 : vector<8x128xf32>
    %cst_5 = arith.constant 0.000000e+00 : f32
    %7 = vector.broadcast %cst_5 : f32 to vector<8x128xf32>
    %8 = arith.maximumf %6, %7 : vector<8x128xf32>
    %9 = arith.truncf %8 : vector<8x128xf32> to vector<8x128xbf16>
    %c0_6 = arith.constant 0 : index
    %c0_7 = arith.constant 0 : index
    %10 = vector.load %arg4[%c0_6, %c0_7] : memref<128x512xbf16, #tpu.memory_space<vmem>>, vector<128x512xbf16>
    %cst_8 = arith.constant dense<0.000000e+00> : vector<8x512xf32>
    %11 = tpu.matmul %9, %10, %cst_8 {dimension_numbers = #tpu.dot_dimension_numbers<[1], [0], [0], [1], [0, 0, 1, 1], [], []>} : vector<8x128xbf16>, vector<128x512xbf16>, vector<8x512xf32> -> vector<8x512xf32>
    %c0_9 = arith.constant 0 : index
    %c0_10 = arith.constant 0 : index
    %12 = vector.load %arg5[%c0_9, %c0_10] : memref<1x512xf32, #tpu.memory_space<vmem>>, vector<1x512xf32>
    %13 = vector.broadcast %12 : vector<1x512xf32> to vector<8x512xf32>
    %14 = arith.addf %11, %13 : vector<8x512xf32>
    %cst_11 = arith.constant 0.000000e+00 : f32
    %15 = vector.broadcast %cst_11 : f32 to vector<8x512xf32>
    %16 = arith.maximumf %14, %15 : vector<8x512xf32>
    %17 = arith.truncf %16 : vector<8x512xf32> to vector<8x512xbf16>
    %c0_12 = arith.constant 0 : index
    %c0_13 = arith.constant 0 : index
    %18 = vector.load %arg6[%c0_12, %c0_13] : memref<512x128xbf16, #tpu.memory_space<vmem>>, vector<512x128xbf16>
    %cst_14 = arith.constant dense<0.000000e+00> : vector<8x128xf32>
    %19 = tpu.matmul %17, %18, %cst_14 {dimension_numbers = #tpu.dot_dimension_numbers<[1], [0], [0], [1], [0, 0, 1, 1], [], []>} : vector<8x512xbf16>, vector<512x128xbf16>, vector<8x128xf32> -> vector<8x128xf32>
    %c0_15 = arith.constant 0 : index
    %c0_16 = arith.constant 0 : index
    %20 = vector.load %arg7[%c0_15, %c0_16] : memref<1x128xf32, #tpu.memory_space<vmem>>, vector<1x128xf32>
    %21 = vector.broadcast %20 : vector<1x128xf32> to vector<8x128xf32>
    %22 = arith.addf %19, %21 : vector<8x128xf32>
    %cst_17 = arith.constant 0.000000e+00 : f32
    %23 = vector.broadcast %cst_17 : f32 to vector<8x128xf32>
    %24 = arith.maximumf %22, %23 : vector<8x128xf32>
    %25 = arith.truncf %24 : vector<8x128xf32> to vector<8x128xbf16>
    %c0_18 = arith.constant 0 : index
    %c0_19 = arith.constant 0 : index
    %26 = vector.load %arg8[%c0_18, %c0_19] : memref<128x128xbf16, #tpu.memory_space<vmem>>, vector<128x128xbf16>
    %cst_20 = arith.constant dense<0.000000e+00> : vector<8x128xf32>
    %27 = tpu.matmul %25, %26, %cst_20 {dimension_numbers = #tpu.dot_dimension_numbers<[1], [0], [0], [1], [0, 0, 1, 1], [], []>} : vector<8x128xbf16>, vector<128x128xbf16>, vector<8x128xf32> -> vector<8x128xf32>
    %c0_21 = arith.constant 0 : index
    %c0_22 = arith.constant 0 : index
    %28 = vector.load %arg9[%c0_21, %c0_22] : memref<1x128xf32, #tpu.memory_space<vmem>>, vector<1x128xf32>
    %29 = vector.broadcast %28 : vector<1x128xf32> to vector<8x128xf32>
    %30 = arith.addf %27, %29 : vector<8x128xf32>
    %31 = vector.extract_strided_slice %30 {offsets = [0, 0], sizes = [8, 8], strides = [1, 1]} : vector<8x128xf32> to vector<8x8xf32>
    %32 = math.tanh %31 : vector<8x8xf32>
    %c0_23 = arith.constant 0 : index
    %c0_24 = arith.constant 0 : index
    %33 = vector.load %arg10[%c0_23, %c0_24] : memref<8x8xf32, #tpu.memory_space<vmem>>, vector<8x8xf32>
    tpu.vector_store %arg10[%c0_23, %c0_24], %32 {strides = array<i32>} : memref<8x8xf32, #tpu.memory_space<vmem>>, vector<8x8xf32>,
    return
  }
  func.func @transform_0(%arg0: i32) -> (i32, i32) {
    %c0_i32 = arith.constant 0 : i32
    %c0_i32_0 = arith.constant 0 : i32
    return %arg0, %c0_i32 : i32, i32
  }
  func.func @transform_1(%arg0: i32) -> (i32, i32) {
    %c0_i32 = arith.constant 0 : i32
    %c0_i32_0 = arith.constant 0 : i32
    %c0_i32_1 = arith.constant 0 : i32
    return %c0_i32, %c0_i32_0 : i32, i32
  }
  func.func @transform_2(%arg0: i32) -> (i32, i32) {
    %c0_i32 = arith.constant 0 : i32
    %c0_i32_0 = arith.constant 0 : i32
    %c0_i32_1 = arith.constant 0 : i32
    return %c0_i32, %c0_i32_0 : i32, i32
  }
  func.func @transform_3(%arg0: i32) -> (i32, i32) {
    %c0_i32 = arith.constant 0 : i32
    %c0_i32_0 = arith.constant 0 : i32
    %c0_i32_1 = arith.constant 0 : i32
    return %c0_i32, %c0_i32_0 : i32, i32
  }
  func.func @transform_4(%arg0: i32) -> (i32, i32) {
    %c0_i32 = arith.constant 0 : i32
    %c0_i32_0 = arith.constant 0 : i32
    %c0_i32_1 = arith.constant 0 : i32
    return %c0_i32, %c0_i32_0 : i32, i32
  }
  func.func @transform_5(%arg0: i32) -> (i32, i32) {
    %c0_i32 = arith.constant 0 : i32
    %c0_i32_0 = arith.constant 0 : i32
    %c0_i32_1 = arith.constant 0 : i32
    return %c0_i32, %c0_i32_0 : i32, i32
  }
  func.func @transform_6(%arg0: i32) -> (i32, i32) {
    %c0_i32 = arith.constant 0 : i32
    %c0_i32_0 = arith.constant 0 : i32
    %c0_i32_1 = arith.constant 0 : i32
    return %c0_i32, %c0_i32_0 : i32, i32
  }
  func.func @transform_7(%arg0: i32) -> (i32, i32) {
    %c0_i32 = arith.constant 0 : i32
    %c0_i32_0 = arith.constant 0 : i32
    %c0_i32_1 = arith.constant 0 : i32
    return %c0_i32, %c0_i32_0 : i32, i32
  }
  func.func @transform_8(%arg0: i32) -> (i32, i32) {
    %c0_i32 = arith.constant 0 : i32
    %c0_i32_0 = arith.constant 0 : i32
    %c0_i32_1 = arith.constant 0 : i32
    return %c0_i32, %c0_i32_0 : i32, i32
  }
  func.func @transform_9(%arg0: i32) -> (i32, i32) {
    %c0_i32 = arith.constant 0 : i32
    %c0_i32_0 = arith.constant 0 : i32
    return %arg0, %c0_i32 : i32, i32
  }
}

</mosaic_0001>

<bundles_post_ra>
// kernel: tpu_custom_call.1
= control target key start
LH: loop header
LB: loop body
LE: loop exit
PB: predicated region body
PF: predicated region fallthrough
CT: control target
= control target key end

     0   :  { %14 = vsyncpa [#allocation3], 0  ;;  %s1528_s0 = inlined_call_operand.hbm [shape: f32[8,32], index: 0, kind: input, shape index: {}]   ;;  %s1529_s1 = inlined_call_operand.hbm [shape: bf16[32,128], index: 1, kind: input, shape index: {}]   ;;  %s1530_s2 = inlined_call_operand.vmem [shape: f32[1,128], index: 2, kind: input, shape index: {}]   ;;  %s1531_s3 = inlined_call_operand.hbm [shape: bf16[128,512], index: 3, kind: input, shape index: {}]   ;;  %s1532_s4 = inlined_call_operand.vmem [shape: f32[1,512], index: 4, kind: input, shape index: {}]   ;;  %s1533_s5 = inlined_call_operand.hbm [shape: bf16[512,128], index: 5, kind: input, shape index: {}]   ;;  %s1534_s6 = inlined_call_operand.vmem [shape: f32[1,128], index: 6, kind: input, shape index: {}]   ;;  %s1535_s7 = inlined_call_operand.hbm [shape: bf16[128,128], index: 7, kind: input, shape index: {}]   ;;  %s1536_s8 = inlined_call_operand.vmem [shape: f32[1,128], index: 8, kind: input, shape index: {}]   ;;  %s1537_s9 = inlined_call_operand.hbm [shape: f32[8,8], index: 9, kind: output, shape index: {}]  }
   0x1   :  { %15 = vsyncpa [#allocation6], 0 }
   0x2   :  { %16 = vsyncpa [#allocation9], 0 }
   0x3   :  { %17 = vsyncpa [#allocation4], 0  ;;  %s1358_s30 = smov [#allocation5]   ;;  %s1218_s13 = scalar_lea.hbm %s1529_s1, 256 }
   0x4   :  { %s33_s10 = sshll.u32 %s1358_s30, 4  ;;  %p1219_p0 = scmp.ne.s32.totalorder %s1529_s1, %s1218_s13  ;;  %s34_s10 = int_to_ptr.vmem [resolvable:$true] %s33_s10 }
   0x5   :  { %p1222_p1 = scmp.lt.u32.totalorder %s1218_s13, %s1529_s1 }
   0x7   :  { %p1224_p2 = pnand %p1222_p1, %p1219_p0 }
   0x9   :  { %1227 = shalt.err (!%p1224_p2)
}
   0xa   :  { %s1228_s18 = scalar_lea.vmem %s34_s10, 256  ;;  %p1233_p4 = scmp.lt.s32.totalorder %s34_s10, %s34_s10 }
   0xb   :  { %p1229_p3 = scmp.ne.s32.totalorder %s34_s10, %s1228_s18  ;;  %p1234_p5 = scmp.lt.s32.totalorder %s1228_s18, %s1228_s18 }
   0xd   :  { %p1235_p6 = por %p1234_p5, %p1233_p4 }
   0xf   :  { %p1236_p7 = pnand %p1235_p6, %p1229_p3 }
  0x11   :  { %1239 = shalt.err (!%p1236_p7)
}
  0x12   :  { %s1359_s19 = smov 64   ;;  %s1360_s20 = smov 4  }
  0x13   :  { %39 = dma.hbm_to_vmem [thread:$0]  %s1529_s1, 256, %s34_s10, [#allocation6], %s1359_s19, %s1359_s19, %s1360_s20  }
  0x14   :  { %s1361_s23 = smov [#allocation8]   ;;  %s1362_s25 = smov [#allocation2]  }
  0x15   :  { %s61_s24 = sshll.u32 %s1361_s23, 4  ;;  %s24_s26 = sshll.u32 %s1362_s25, 4  ;;  %s62_s24 = int_to_ptr.vmem [resolvable:$true] %s61_s24  ;;  %s25_s26 = int_to_ptr.vmem [resolvable:$true] %s24_s26 }
  0x16   :  { %s1240_s29 = scalar_lea.hbm %s1533_s5, 4096 }
  0x17   :  { %p1241_p8 = scmp.ne.s32.totalorder %s1533_s5, %s1240_s29  ;;  %p1244_p9 = scmp.lt.u32.totalorder %s1240_s29, %s1533_s5 }
  0x19   :  { %p1246_p10 = pnand %p1244_p9, %p1241_p8 }
  0x1b   :  { %1249 = shalt.err (!%p1246_p10)
}
  0x1c   :  { %s1250_s1 = scalar_lea.vmem %s62_s24, 4096  ;;  %p1255_p12 = scmp.lt.s32.totalorder %s62_s24, %s62_s24 }
  0x1d   :  { %p1251_p11 = scmp.ne.s32.totalorder %s62_s24, %s1250_s1  ;;  %p1256_p13 = scmp.lt.s32.totalorder %s1250_s1, %s1250_s1 }
  0x1f   :  { %p1257_p0 = por %p1256_p13, %p1255_p12 }
  0x21   :  { %p1258_p1 = pnand %p1257_p0, %p1251_p11 }
  0x23   :  { %1261 = shalt.err (!%p1258_p1)
}
  0x24   :  { %67 = dma.hbm_to_vmem [thread:$0]  %s1533_s5, 4096, %s62_s24, [#allocation9], %s1359_s19, %s1359_s19, %s1360_s20  }
  0x25   :  { %s1262_s17 = scalar_lea.hbm %s1528_s0, 128 }
  0x26   :  { %p1263_p2 = scmp.ne.s32.totalorder %s1528_s0, %s1262_s17  ;;  %p1266_p3 = scmp.lt.u32.totalorder %s1262_s17, %s1528_s0 }
  0x28   :  { %p1268_p4 = pnand %p1266_p3, %p1263_p2 }
  0x2a   :  { %1271 = shalt.err (!%p1268_p4)
}
  0x2b   :  { %s1272_s25 = scalar_lea.vmem %s25_s26, 128  ;;  %p1277_p6 = scmp.lt.s32.totalorder %s25_s26, %s25_s26 }
  0x2c   :  { %p1273_p5 = scmp.ne.s32.totalorder %s25_s26, %s1272_s25  ;;  %p1278_p7 = scmp.lt.s32.totalorder %s1272_s25, %s1272_s25 }
  0x2e   :  { %p1279_p8 = por %p1278_p7, %p1277_p6 }
  0x30   :  { %p1280_p9 = pnand %p1279_p8, %p1273_p5 }
  0x32   :  { %1283 = shalt.err (!%p1280_p9)
}
  0x33   :  { %27 = dma.hbm_to_vmem [thread:$0]  %s1528_s0, 128, %s25_s26, [#allocation3]  }
  0x34   :  { %s1363_s27 = smov [#allocation7]   ;;  %s1284_s11 = scalar_lea.hbm %s1531_s3, 4096 }
  0x35   :  { %s47_s28 = sshll.u32 %s1363_s27, 4  ;;  %p1285_p10 = scmp.ne.s32.totalorder %s1531_s3, %s1284_s11  ;;  %s48_s28 = int_to_ptr.vmem [resolvable:$true] %s47_s28 }
  0x36   :  { %p1288_p11 = scmp.lt.u32.totalorder %s1284_s11, %s1531_s3 }
  0x38   :  { %p1290_p12 = pnand %p1288_p11, %p1285_p10 }
  0x3a   :  { %1293 = shalt.err (!%p1290_p12)
}
  0x3b   :  { %s1294_s14 = scalar_lea.vmem %s48_s28, 4096  ;;  %p1299_p0 = scmp.lt.s32.totalorder %s48_s28, %s48_s28 }
  0x3c   :  { %p1295_p13 = scmp.ne.s32.totalorder %s48_s28, %s1294_s14  ;;  %p1300_p1 = scmp.lt.s32.totalorder %s1294_s14, %s1294_s14 }
  0x3e   :  { %p1301_p2 = por %p1300_p1, %p1299_p0 }
  0x40   :  { %p1302_p3 = pnand %p1301_p2, %p1295_p13 }
  0x42   :  { %1305 = shalt.err (!%p1302_p3)
}
  0x43   :  { %s1364_s0 = smov 256   ;;  %s1365_s26 = smov 16  }
  0x44   :  { %53 = dma.hbm_to_vmem [thread:$0]  %s1531_s3, 4096, %s48_s28, [#allocation6], %s1364_s0, %s1364_s0, %s1365_s26  }
  0x45   :  { %s1366_s17 = smov [#allocation10]   ;;  %s1306_s23 = scalar_lea.hbm %s1535_s7, 1024 }
  0x46   :  { %s75_s18 = sshll.u32 %s1366_s17, 4  ;;  %p1307_p4 = scmp.ne.s32.totalorder %s1535_s7, %s1306_s23  ;;  %s76_s18 = int_to_ptr.vmem [resolvable:$true] %s75_s18 }
  0x47   :  { %p1310_p5 = scmp.lt.u32.totalorder %s1306_s23, %s1535_s7 }
  0x49   :  { %p1312_p6 = pnand %p1310_p5, %p1307_p4 }
  0x4b   :  { %1315 = shalt.err (!%p1312_p6)
}
  0x4c   :  { %s1316_s29 = scalar_lea.vmem %s76_s18, 1024  ;;  %p1321_p8 = scmp.lt.s32.totalorder %s76_s18, %s76_s18 }
  0x4d   :  { %p1317_p7 = scmp.ne.s32.totalorder %s76_s18, %s1316_s29  ;;  %p1322_p9 = scmp.lt.s32.totalorder %s1316_s29, %s1316_s29 }
  0x4f   :  { %p1323_p10 = por %p1322_p9, %p1321_p8 }
  0x51   :  { %p1324_p11 = pnand %p1323_p10, %p1317_p7 }
  0x53   :  { %1327 = shalt.err (!%p1324_p11)
}
  0x54   :  { %81 = dma.hbm_to_vmem [thread:$0]  %s1535_s7, 1024, %s76_s18, [#allocation9], %s1359_s19, %s1359_s19, %s1360_s20  }
  0x55   :  { %1350 = dma.done.wait [#allocation3], 128  }
  0x56   :  { %1351 = vsyncadd [#allocation3], 4294967168 }
  0x57   :  { %1352 = dma.done.wait [#allocation6], 4352  }
  0x58   :  { %1353 = vsyncadd [#allocation6], 4294962944 }
  0x59   :  { %1354 = dma.done.wait [#allocation9], 5120  }
  0x5a   :  { %1355 = vsyncadd [#allocation9], 4294962176  ;;  %v1367_v0 = vmov 0.0   ;;  %vm1368_vm0 = vmmov 0   ;;  %v1126_v1 = vld [vmem:[#allocation5] sm:$0xff]   ;;  %v1127_v2 = vld [vmem:[#allocation5 + $0x8] sm:$0xff]  }
  0x5b   :  { %1085 = vmatprep.subr.bf16.mxu0 %v1367_v0  ;;  %1089 = vmatprep.mubr.msk.bf16.mxu0 %vm1368_vm0, %v1367_v0  ;;  %v100_v3 = vld [vmem:[#allocation2] sm:$0xff]  ;;  %v1128_v4 = vld [vmem:[#allocation7 + $0x4] ss:$16 sps:$4 sm:$0xff]   ;;  %v1133_v6 = vld [vmem:[#allocation7] ss:$16 sps:$4 sm:$0xff]   ;;  %vm125_vm1 = vcmask 261120  }
  0x5c   :  { %1086 = vmatpush3.bf16.msra.mxu0 %v1126_v1  ;;  %v1132_v5 = vld [vmem:[#allocation7 + $0xc] ss:$16 sps:$4 sm:$0xff]   ;;  %v101_v7 = vpack.c.bf16 %v100_v3, %v100_v3  ;;  %385 = vmatprep.subr.bf16.mxu1 %v1128_v4  ;;  %v1134_v8 = vld [vmem:[#allocation7 + $0x24] ss:$16 sps:$4 sm:$0xff]   ;;  %v1130_v9 = vld [vmem:[#allocation7 + $0x8] ss:$16 sps:$4 sm:$0xff]  }
  0x5d   :  { %1087 = vmatprep.subr.bf16.mxu0 %v1367_v0  ;;  %386 = vmatpush1.bf16.msra.mxu1 %v1133_v6  ;;  %v1138_v10 = vld [vmem:[#allocation7 + $0x2c] ss:$16 sps:$4 sm:$0xff]   ;;  %v1139_v11 = vld [vmem:[#allocation7 + $0x20] ss:$16 sps:$4 sm:$0xff]   ;;  %v1140_v12 = vld [vmem:[#allocation7 + $0x44] ss:$16 sps:$4 sm:$0xff]  }
  0x5e   :  { %387 = vmatprep.subr.bf16.mxu1 %v1134_v8  ;;  %v1136_v13 = vld [vmem:[#allocation7 + $0x28] ss:$16 sps:$4 sm:$0xff]   ;;  %v1144_v14 = vld [vmem:[#allocation7 + $0x4c] ss:$16 sps:$4 sm:$0xff]   ;;  %v1145_v15 = vld [vmem:[#allocation7 + $0x40] ss:$16 sps:$4 sm:$0xff]  }
  0x5f   :  { %v1146_v16 = vld [vmem:[#allocation7 + $0x64] ss:$16 sps:$4 sm:$0xff]   ;;  %v1142_v17 = vld [vmem:[#allocation7 + $0x48] ss:$16 sps:$4 sm:$0xff]   ;;  %v1151_v18 = vld [vmem:[#allocation7 + $0x60] ss:$16 sps:$4 sm:$0xff]  }
  0x60   :  { %1088 = vmatpush3.bf16.msra.mxu0 %v1127_v2  ;;  %v1150_v19 = vld [vmem:[#allocation7 + $0x6c] ss:$16 sps:$4 sm:$0xff]   ;;  %v1152_v20 = vld [vmem:[#allocation7 + $0x84] ss:$16 sps:$4 sm:$0xff]   ;;  %v1148_v21 = vld [vmem:[#allocation7 + $0x68] ss:$16 sps:$4 sm:$0xff]  }
  0x61   :  { %426 = vmatprep.subr.bf16.mxu0 %v1132_v5  ;;  %388 = vmatpush1.bf16.msra.mxu1 %v1139_v11  ;;  %v1156_v22 = vld [vmem:[#allocation7 + $0x8c] ss:$16 sps:$4 sm:$0xff]   ;;  %v1157_v23 = vld [vmem:[#allocation7 + $0x80] ss:$16 sps:$4 sm:$0xff]   ;;  %v1158_v24 = vld [vmem:[#allocation7 + $0xa4] ss:$16 sps:$4 sm:$0xff]  }
  0x62   :  { %389 = vmatprep.subr.bf16.mxu1 %v1140_v12  ;;  %v1154_v25 = vld [vmem:[#allocation7 + $0x88] ss:$16 sps:$4 sm:$0xff]   ;;  %v1163_v26 = vld [vmem:[#allocation7 + $0xa0] ss:$16 sps:$4 sm:$0xff]   ;;  %v1162_v27 = vld [vmem:[#allocation7 + $0xac] ss:$16 sps:$4 sm:$0xff]  }
  0x63   :  { %1090 = vmatmul.mubr.msk.bf16.vlgmr.msra.gmra.mrb[0].mxu0 %vm125_vm1, %v101_v7  ;;  %v1164_v28 = vld [vmem:[#allocation7 + $0xc4] ss:$16 sps:$4 sm:$0xff]   ;;  %v1160_v29 = vld [vmem:[#allocation7 + $0xa8] ss:$16 sps:$4 sm:$0xff]   ;;  %v1168_v30 = vld [vmem:[#allocation7 + $0xcc] ss:$16 sps:$4 sm:$0xff]  }
  0x64   :  { %427 = vmatpush1.bf16.msra.mxu0 %v1130_v9  ;;  %v1166_v31 = vld [vmem:[#allocation7 + $0xc8] ss:$16 sps:$4 sm:$0xff]   ;;  %v1169_v32 = vld [vmem:[#allocation7 + $0xc0] ss:$16 sps:$4 sm:$0xff]   ;;  %v1170_v33 = vld [vmem:[#allocation7 + $0xe4] ss:$16 sps:$4 sm:$0xff]  }
  0x65   :  { %428 = vmatprep.subr.bf16.mxu0 %v1138_v10  ;;  %390 = vmatpush1.bf16.msra.mxu1 %v1145_v15  ;;  %v1174_v34 = vld [vmem:[#allocation7 + $0xec] ss:$16 sps:$4 sm:$0xff]   ;;  %v1172_v35 = vld [vmem:[#allocation7 + $0xe8] ss:$16 sps:$4 sm:$0xff]   ;;  %v1175_v36 = vld [vmem:[#allocation7 + $0xe0] ss:$16 sps:$4 sm:$0xff]   ;;  %v205_v15 = vlaneseq }
  0x66   :  { %391 = vmatprep.subr.bf16.mxu1 %v1146_v16  ;;  %v1369_v37 = vmov 0   ;;  %v1176_v38 = vld [vmem:[#allocation8 + $0x40] sm:$0xff]   ;;  %v951_v40 = vld [vmem:[%s1530_s2] ss:$0 sm:$0xff]  ;;  %v1184_v54 = vld [vmem:[#allocation8 + $0x50] sm:$0xff]   ;;  %vm932_vm2 = vcmask 64512  }
  0x67   :  { %417 = vmatprep.mubr.bf16.mxu1 %v1369_v37  ;;  %458 = vmatprep.mubr.bf16.mxu0 %v1369_v37  ;;  %v1177_v39 = vld [vmem:[#allocation8 + $0xc0] sm:$0xff]   ;;  %v1180_v50 = vld [vmem:[#allocation8 + $0x48] sm:$0xff]   ;;  %v1185_v55 = vld [vmem:[#allocation8 + $0xd0] sm:$0xff]   ;;  %v206_v16 = vshrl.u32 %v205_v15, 7 }
  0x68   :  { %429 = vmatpush1.bf16.msra.mxu0 %v1136_v13  ;;  %v1178_v47 = vld [vmem:[#allocation8] sm:$0xff]   ;;  %v1181_v51 = vld [vmem:[#allocation8 + $0xc8] sm:$0xff]   ;;  %v1186_v56 = vld [vmem:[#allocation8 + $0x10] sm:$0xff]  }
  0x69   :  { %430 = vmatprep.subr.bf16.mxu0 %v1144_v14  ;;  %392 = vmatpush1.bf16.msra.mxu1 %v1151_v18  ;;  %v1179_v48 = vld [vmem:[#allocation8 + $0x80] sm:$0xff]   ;;  %v1182_v52 = vld [vmem:[#allocation8 + $0x8] sm:$0xff]   ;;  %v1187_v57 = vld [vmem:[#allocation8 + $0x90] sm:$0xff]   ;;  %v215_v18 = vsub.s32 2, %v206_v16 }
  0x6a   :  { %393 = vmatprep.subr.bf16.mxu1 %v1152_v20  ;;  %v1183_v53 = vld [vmem:[#allocation8 + $0x88] sm:$0xff]   ;;  %v1188_v58 = vld [vmem:[#allocation8 + $0x58] sm:$0xff]   ;;  %v1192_v62 = vld [vmem:[#allocation8 + $0x60] sm:$0xff]   ;;  %v211_v20 = vsub.s32 1, %v206_v16 }
  0x6b   :  { %v1189_v59 = vld [vmem:[#allocation8 + $0xd8] sm:$0xff]   ;;  %v1193_v63 = vld [vmem:[#allocation8 + $0xe0] sm:$0xff]   ;;  %v1196_v3 = vld [vmem:[#allocation8 + $0x68] sm:$0xff]  }
  0x6c   :  { %431 = vmatpush1.bf16.msra.mxu0 %v1142_v17  ;;  %v1190_v60 = vld [vmem:[#allocation8 + $0x18] sm:$0xff]   ;;  %v1194_v1 = vld [vmem:[#allocation8 + $0x20] sm:$0xff]   ;;  %v1197_v4 = vld [vmem:[#allocation8 + $0xe8] sm:$0xff]   ;;  %v207_v17 = vsub.s32 0, %v206_v16 }
  0x6d   :  { %432 = vmatprep.subr.bf16.mxu0 %v1150_v19  ;;  %394 = vmatpush1.bf16.msra.mxu1 %v1157_v23  ;;  %v1191_v61 = vld [vmem:[#allocation8 + $0x98] sm:$0xff]   ;;  %v1195_v2 = vld [vmem:[#allocation8 + $0xa0] sm:$0xff]   ;;  %v1198_v5 = vld [vmem:[#allocation8 + $0x28] sm:$0xff]  }
  0x6e   :  { %395 = vmatprep.subr.bf16.mxu1 %v1158_v24  ;;  %v1199_v6 = vld [vmem:[#allocation8 + $0xa8] sm:$0xff]   ;;  %v1200_v7 = vld [vmem:[#allocation8 + $0x70] sm:$0xff]   ;;  %v1204_v11 = vld [vmem:[#allocation8 + $0x78] sm:$0xff]  }
  0x6f   :  { %v1201_v8 = vld [vmem:[#allocation8 + $0xf0] sm:$0xff]   ;;  %v1205_v12 = vld [vmem:[#allocation8 + $0xf8] sm:$0xff]   ;;  %v203_v19 = vld [vmem:[%s1532_s4] sm:$0xf] }
  0x70   :  { %433 = vmatpush1.bf16.msra.mxu0 %v1148_v21  ;;  %v1202_v9 = vld [vmem:[#allocation8 + $0x30] sm:$0xff]   ;;  %v1206_v13 = vld [vmem:[#allocation8 + $0x38] sm:$0xff]   ;;  %v219_v21 = vsub.s32 3, %v206_v16  ;;  %v216_v23 = vrot.slane %v203_v19, %v215_v18  ;;  %v212_v24 = vrot.slane %v203_v19, %v211_v20 }
  0x71   :  { %434 = vmatprep.subr.bf16.mxu0 %v1156_v22  ;;  %396 = vmatpush1.bf16.msra.mxu1 %v1163_v26  ;;  %v1203_v10 = vld [vmem:[#allocation8 + $0xb0] sm:$0xff]   ;;  %v1207_v14 = vld [vmem:[#allocation8 + $0xb8] sm:$0xff]   ;;  %v208_v22 = vrot.slane %v203_v19, %v207_v17 }
  0x72   :  { %397 = vmatprep.subr.bf16.mxu1 %v1164_v28 }
  0x74   :  { %435 = vmatpush1.bf16.msra.mxu0 %v1154_v25  ;;  %v220_v25 = vrot.slane %v203_v19, %v219_v21 }
  0x75   :  { %436 = vmatprep.subr.bf16.mxu0 %v1162_v27  ;;  %398 = vmatpush1.bf16.msra.mxu1 %v1169_v32 }
  0x76   :  { %399 = vmatprep.subr.bf16.mxu1 %v1170_v33 }
  0x78   :  { %437 = vmatpush1.bf16.msra.mxu0 %v1160_v29 }
  0x79   :  { %438 = vmatprep.subr.bf16.mxu0 %v1168_v30  ;;  %400 = vmatpush1.bf16.msra.mxu1 %v1175_v36 }
  0x7a   :  { %1032 = vmatprep.subr.bf16.mxu1 %v1176_v38 }
  0x7c   :  { %439 = vmatpush1.bf16.msra.mxu0 %v1166_v31 }
  0x7d   :  { %440 = vmatprep.subr.bf16.mxu0 %v1174_v34 }
  0x80   :  { %441 = vmatpush1.bf16.msra.mxu0 %v1172_v35 }
  0x81   :  { %1054 = vmatprep.subr.bf16.mxu0 %v1177_v39 }
 0x136   :  { %v163_v41 = vpop.f32.mrb[0].mxu0 }
 0x137   :  { %v164_v42 = vadd.f32 %v951_v40, %v163_v41  ;;  %v1091_v43 = vpop.f32.mrb[1].mxu0 }
 0x138   :  { %v166_v44 = vpop.f32.mrb[2].mxu0 }
 0x139   :  { %v169_v45 = vmax.f32 %v164_v42, 0.0  ;;  %v1092_v46 = vpop.f32.mrb[3].mxu0  ;;  %v1208_v44 = vld [vmem:[#allocation10] sm:$0xff]  }
 0x13b   :  { %v170_v49 = vpack.c.bf16 %v169_v45, %v169_v45 }
 0x13d   :  { %418 = vmatmul.mubr.bf16.vlgmr.msra.gmra.mrb[0].mxu1 %v170_v49  ;;  %459 = vmatmul.mubr.bf16.vlgmr.msra.gmra.mrb[4].mxu0 %v170_v49  ;;  %v1211_v49 = vld [vmem:[#allocation10 + $0x18] sm:$0xff]  }
 0x13e   :  { %1033 = vmatpush3.bf16.msra.mxu1 %v1178_v47  ;;  %1055 = vmatpush3.bf16.msra.mxu0 %v1179_v48  ;;  %v1209_v47 = vld [vmem:[#allocation10 + $0x8] sm:$0xff]   ;;  %v1210_v48 = vld [vmem:[#allocation10 + $0x10] sm:$0xff]  }
 0x13f   :  { %1034 = vmatprep.subr.bf16.mxu1 %v1180_v50  ;;  %1056 = vmatprep.subr.bf16.mxu0 %v1181_v51  ;;  %v1212_v50 = vld [vmem:[#allocation10 + $0x20] sm:$0xff]   ;;  %v1213_v51 = vld [vmem:[#allocation10 + $0x28] sm:$0xff]  }
 0x142   :  { %1035 = vmatpush3.bf16.msra.mxu1 %v1182_v52  ;;  %1057 = vmatpush3.bf16.msra.mxu0 %v1183_v53  ;;  %v1214_v52 = vld [vmem:[#allocation10 + $0x30] sm:$0xff]   ;;  %v1215_v53 = vld [vmem:[#allocation10 + $0x38] sm:$0xff]  }
 0x143   :  { %1036 = vmatprep.subr.bf16.mxu1 %v1184_v54  ;;  %1058 = vmatprep.subr.bf16.mxu0 %v1185_v55 }
 0x146   :  { %1037 = vmatpush3.bf16.msra.mxu1 %v1186_v56  ;;  %1059 = vmatpush3.bf16.msra.mxu0 %v1187_v57  ;;  %v987_v56 = vld [vmem:[%s1534_s6] ss:$0 sm:$0xff]  ;;  %s1370_s6 = smov [#allocation11]  }
 0x147   :  { %1038 = vmatprep.subr.bf16.mxu1 %v1188_v58  ;;  %1060 = vmatprep.subr.bf16.mxu0 %v1189_v59  ;;  %s940_s13 = sshll.u32 %s1370_s6, 4  ;;  %s941_s13 = int_to_ptr.vmem [resolvable:$true] %s940_s13 }
 0x148   :  { %s1328_s1 = scalar_lea.vmem %s941_s13, 128  ;;  %p1333_p13 = scmp.lt.s32.totalorder %s941_s13, %s941_s13 }
 0x149   :  { %p1329_p12 = scmp.ne.s32.totalorder %s941_s13, %s1328_s1  ;;  %p1334_p0 = scmp.lt.s32.totalorder %s1328_s1, %s1328_s1 }
 0x14a   :  { %1039 = vmatpush3.bf16.msra.mxu1 %v1190_v60  ;;  %1061 = vmatpush3.bf16.msra.mxu0 %v1191_v61 }
 0x14b   :  { %1040 = vmatprep.subr.bf16.mxu1 %v1192_v62  ;;  %1062 = vmatprep.subr.bf16.mxu0 %v1193_v63  ;;  %p1335_p1 = por %p1334_p0, %p1333_p13 }
 0x14d   :  { %p1336_p2 = pnand %p1335_p1, %p1329_p12 }
 0x14e   :  { %1041 = vmatpush3.bf16.msra.mxu1 %v1194_v1  ;;  %1063 = vmatpush3.bf16.msra.mxu0 %v1195_v2 }
 0x14f   :  { %1042 = vmatprep.subr.bf16.mxu1 %v1196_v3  ;;  %1064 = vmatprep.subr.bf16.mxu0 %v1197_v4 }
 0x152   :  { %1043 = vmatpush3.bf16.msra.mxu1 %v1198_v5  ;;  %1065 = vmatpush3.bf16.msra.mxu0 %v1199_v6  ;;  %v1020_v5 = vld [vmem:[%s1536_s8] ss:$0 sm:$0xff] }
 0x153   :  { %1044 = vmatprep.subr.bf16.mxu1 %v1200_v7  ;;  %1066 = vmatprep.subr.bf16.mxu0 %v1201_v8 }
 0x156   :  { %1045 = vmatpush3.bf16.msra.mxu1 %v1202_v9  ;;  %1067 = vmatpush3.bf16.msra.mxu0 %v1203_v10 }
 0x157   :  { %1046 = vmatprep.subr.bf16.mxu1 %v1204_v11  ;;  %1068 = vmatprep.subr.bf16.mxu0 %v1205_v12 }
 0x15a   :  { %1047 = vmatpush3.bf16.msra.mxu1 %v1206_v13  ;;  %1069 = vmatpush3.bf16.msra.mxu0 %v1207_v14 }
 0x15b   :  { %1093 = vmatprep.subr.bf16.mxu1 %v1367_v0 }
 0x210   :  { %v419_v26 = vpop.f32.mrb[0].mxu1  ;;  %v460_v27 = vpop.f32.mrb[4].mxu0 }
 0x211   :  { %v420_v28 = vadd.f32 %v419_v26, %v208_v22  ;;  %v461_v29 = vadd.f32 %v460_v27, %v216_v23  ;;  %v421_v30 = vpop.f32.mrb[1].mxu1  ;;  %v462_v31 = vpop.f32.mrb[5].mxu0 }
 0x212   :  { %v422_v32 = vadd.f32 %v421_v30, %v212_v24  ;;  %v463_v33 = vadd.f32 %v462_v31, %v220_v25  ;;  %v423_v34 = vpop.f32.mrb[2].mxu1  ;;  %v464_v35 = vpop.f32.mrb[6].mxu0 }
 0x213   :  { %v467_v36 = vmax.f32 %v420_v28, 0.0  ;;  %v469_v37 = vmax.f32 %v461_v29, 0.0  ;;  %v424_v38 = vpop.f32.mrb[3].mxu1  ;;  %v465_v39 = vpop.f32.mrb[7].mxu0 }
 0x214   :  { %v468_v40 = vmax.f32 %v422_v32, 0.0  ;;  %v470_v41 = vmax.f32 %v463_v33, 0.0 }
 0x215   :  { %v471_v45 = vpack.c.bf16 %v467_v36, %v467_v36  ;;  %v473_v46 = vpack.c.bf16 %v469_v37, %v469_v37 }
 0x216   :  { %v472_v42 = vpack.c.bf16 %v468_v40, %v468_v40  ;;  %v474_v43 = vpack.c.bf16 %v470_v41, %v470_v41 }
 0x218   :  { %770 = vmatprep.mubr.bf16.mxu1 %v472_v42  ;;  %810 = vmatprep.mubr.bf16.mxu0 %v474_v43 }
 0x219   :  { %771 = vmatmul.mubr.bf16.vlgmr.msra.gmra.mrb[4].mxu1 %v471_v45  ;;  %811 = vmatmul.mubr.bf16.vlgmr.msra.gmra.mrb[8].mxu0 %v473_v46 }
 0x21a   :  { %1094 = vmatpush3.bf16.msra.mxu1 %v1208_v44  ;;  %1109 = vmatprep.mubr.msk.bf16.mxu1 %vm1368_vm0, %v1367_v0 }
 0x21b   :  { %1095 = vmatprep.subr.bf16.mxu1 %v1367_v0 }
 0x21e   :  { %1096 = vmatpush3.bf16.msra.mxu1 %v1209_v47 }
 0x21f   :  { %1097 = vmatprep.subr.bf16.mxu1 %v1367_v0 }
 0x222   :  { %1098 = vmatpush3.bf16.msra.mxu1 %v1210_v48 }
 0x223   :  { %1099 = vmatprep.subr.bf16.mxu1 %v1367_v0 }
 0x226   :  { %1100 = vmatpush3.bf16.msra.mxu1 %v1211_v49 }
 0x227   :  { %1101 = vmatprep.subr.bf16.mxu1 %v1367_v0 }
 0x22a   :  { %1102 = vmatpush3.bf16.msra.mxu1 %v1212_v50 }
 0x22b   :  { %1103 = vmatprep.subr.bf16.mxu1 %v1367_v0 }
 0x22e   :  { %1104 = vmatpush3.bf16.msra.mxu1 %v1213_v51 }
 0x22f   :  { %1105 = vmatprep.subr.bf16.mxu1 %v1367_v0 }
 0x232   :  { %1106 = vmatpush3.bf16.msra.mxu1 %v1214_v52 }
 0x233   :  { %1107 = vmatprep.subr.bf16.mxu1 %v1367_v0 }
 0x236   :  { %1108 = vmatpush3.bf16.msra.mxu1 %v1215_v53 }
 0x2ec   :  { %v1048_v54 = vpop.f32.mrb[4].mxu1  ;;  %v1070_v55 = vpop.f32.mrb[8].mxu0 }
 0x2ed   :  { %v1049_v57 = vpop.f32.mrb[5].mxu1  ;;  %v1071_v58 = vpop.f32.mrb[9].mxu0 }
 0x2ee   :  { %v1050_v59 = vadd.f32 %v1049_v57, %v1048_v54  ;;  %v1072_v60 = vadd.f32 %v1071_v58, %v1070_v55  ;;  %v1051_v61 = vpop.f32.mrb[6].mxu1  ;;  %v1073_v62 = vpop.f32.mrb[10].mxu0 }
 0x2ef   :  { %v1052_v63 = vpop.f32.mrb[7].mxu1  ;;  %v1074_v1 = vpop.f32.mrb[11].mxu0 }
 0x2f0   :  { %v773_v2 = vadd.f32 %v1050_v59, %v987_v56 }
 0x2f2   :  { %v813_v3 = vadd.f32 %v1072_v60, %v773_v2 }
 0x2f4   :  { %v818_v4 = vmax.f32 %v813_v3, 0.0 }
 0x2f6   :  { %v819_v0 = vpack.c.bf16 %v818_v4, %v818_v4 }
 0x2f8   :  { %1110 = vmatmul.mubr.bf16.vlgmr.msra.gmra.mrb[8].mxu1 %v819_v0 }
 0x3cb   :  { %v925_v6 = vpop.f32.mrb[8].mxu1 }
 0x3cc   :  { %v926_v7 = vadd.f32 %v1020_v5, %v925_v6  ;;  %v1111_v8 = vpop.f32.mrb[9].mxu1 }
 0x3cd   :  { %v928_v9 = vpop.f32.mrb[10].mxu1 }
 0x3ce   :  { %1216 = vtanh.f32 %v926_v7  ;;  %v1112_v10 = vpop.f32.mrb[11].mxu1 }
 0x3d8   :  { %v1217_v11 = vpop.eup %1216 }
 0x3d9   :  { %933 = vst.msk [vmem:[#allocation11] sm:$0xff] %vm932_vm2, %v1217_v11 }
 0x3da   :  { %1339 = shalt.err (!%p1336_p2)
}
 0x3db   :  { %s1340_s14 = scalar_lea.hbm %s1537_s9, 128 }
 0x3dc   :  { %p1341_p3 = scmp.ne.s32.totalorder %s1537_s9, %s1340_s14  ;;  %p1344_p4 = scmp.lt.u32.totalorder %s1340_s14, %s1537_s9 }
 0x3de   :  { %p1346_p5 = pnand %p1344_p4, %p1341_p3 }
 0x3e0   :  { %1349 = shalt.err (!%p1346_p5)
}
 0x3e1   :  { %943 = dma.vmem_to_hbm [thread:$0]  %s941_s13, 128, %s1537_s9, [#allocation4]  }
 0x3e2   :  { %1356 = dma.done.wait [#allocation4], 128  }
 0x3e3   :  { %1357 = vsyncadd [#allocation4], 4294967168 }
 0x3e4   :  { %947 = vsyncpa [#allocation3], 1 }
 0x3e5   :  { %948 = vsyncpa [#allocation6], 1 }
 0x3e6   :  { %949 = vsyncpa [#allocation9], 1 }
 0x3e7   :  { %950 = vsyncpa [#allocation4], 1 }

</bundles_post_ra>
